<compile_context>
chip_gen: v6e
topology: v6e:2x2x1
jax: 0.10.0
libtpu: 0.0.40
codegen_flags: <defaults>
</compile_context>

<pallas_src>
import functools

import jax
import jax.numpy as jnp
from jax.experimental import pallas as pl
from jax.experimental.pallas import tpu as pltpu


def _agg_kernel(idx_ref, x_ref, out_ref, acc_ref, *, d_feat, is_mean):
    """One grid step: accumulate segment-sums of one input chunk into acc_ref.

    idx_ref : [1, TN]   int32     target output row of each input row in the chunk
    x_ref   : [TN, Dp]  bfloat16  fused (s | V.flat | ones | 0-pad) features
    out_ref : [TM, Dp]  float32   output tile (resident across the reduction axis)
    acc_ref : [TM, Dp]  float32   scratch segment-sum accumulator
    d_feat  : column holding the ones-column (i.e. the per-row counts after matmul)
    """
    k = pl.program_id(1)

    @pl.when(k == 0)
    def _init():
        acc_ref[...] = jnp.zeros_like(acc_ref)

    tm = acc_ref.shape[0]
    # [TM, 1] output-row ids; broadcast-compare against the [1, TN] index chunk.
    row_ids = pl.program_id(0) * tm + jax.lax.broadcasted_iota(jnp.int32, (tm, 1), 0)
    # 0/1 is exact in bf16; keeps the matmul on the fast bf16 MXU path.
    onehot = (idx_ref[...] == row_ids).astype(jnp.bfloat16)          # [TM, TN]

    # Segment-sums AND counts (via the ones-column) in one MXU matmul, f32 accum.
    acc_ref[...] += jnp.dot(onehot, x_ref[...], preferred_element_type=jnp.float32)

    @pl.when(k == pl.num_programs(1) - 1)
    def _finalize():
        res = acc_ref[...]
        if is_mean:
            cnt = res[:, d_feat:d_feat + 1]                # counts (f32-exact < 2^24)
            # Empty segments -> 0 (matches scatter(..., reduce='mean')).
            inv = pl.reciprocal(jnp.maximum(cnt, 1.0), approx=True)   # EUP slot
            res = res * inv
        out_ref[...] = res.astype(out_ref.dtype)


def aggregation_forward(s, V, index, *, reduce="mean", tile_m=1024, tile_n=1024):
    """s: [N, d_s], V: [N, r, d_v], index: [N] int.  dim_size = len(s) (per spec).

    Note: index values outside [0, M) (including negatives) are silently dropped
    by the one-hot match instead of raising like torch scatter.
    """
    # TODO(synk): only 'mean' and 'sum' are implemented (module default is 'mean');
    # 'max'/'min' would need a running-max accumulator, not a one-hot matmul.
    if reduce not in ("mean", "sum"):
        raise NotImplementedError(f"reduce={reduce!r} not supported (mean/sum only)")

    N, d_s = s.shape
    _, r, d_v = V.shape
    M = N                          # dim_size = len(s)
    D = d_s + r * d_v              # real feature width
    Dp = pl.cdiv(D + 1, 128) * 128 # +1 ones-column, padded lane-dense to 128

    # Fused lane-dense bf16 feature slab: (s | V.flat | ones | zero-pad).
    X = jnp.concatenate(
        [s.reshape(N, d_s).astype(jnp.bfloat16),
         V.reshape(N, r * d_v).astype(jnp.bfloat16),
         jnp.ones((N, 1), dtype=jnp.bfloat16)],
        axis=-1,
    )
    idx = index.astype(jnp.int32)

    # Reduction-axis tile over input rows; 128-aligned (lane axis of idx, MXU K).
    TN = min(tile_n, max(N, 1))
    TN = pl.cdiv(TN, 128) * 128
    N_pad = pl.cdiv(N, TN) * TN
    # Padded rows: zero features (zero ones-column) AND index -1 -> never counted.
    X = jnp.pad(X, ((0, N_pad - N), (0, Dp - (D + 1))))
    idx = jnp.pad(idx, (0, N_pad - N), constant_values=-1)
    idx2 = idx.reshape(1, N_pad)

    # Output-row tile (sublane axis).  Cap at ceil(M/2) so the "parallel" axis
    # has >= 2 tiles and can shard across v7x's two TensorCores.
    TM = min(tile_m, M)
    if TM == M and M >= 16:
        TM = pl.cdiv(M, 2)
    if TM < M:
        TM = min(M, pl.cdiv(TM, 8) * 8)      # sublane-align partial tiles
    grid_m = pl.cdiv(M, TM)
    grid = (grid_m, N_pad // TN)

    # VMEM budget: double-buffered X/idx/out, the accumulator, and the [TM,TN]
    # one-hot intermediates; clamp to stay inside v7x's 64 MiB physical VMEM.
    vmem_est = (2 * TN * Dp * 2 + 2 * 8 * TN * 4 + 2 * TM * Dp * 4
                + TM * Dp * 4 + TM * TN * 8)
    vmem_limit = min(max(32 * 1024 * 1024, 2 * vmem_est), 48 * 1024 * 1024)

    y = pl.pallas_call(
        functools.partial(_agg_kernel, d_feat=D, is_mean=(reduce == "mean")),
        out_shape=jax.ShapeDtypeStruct((M, Dp), jnp.float32),
        grid_spec=pltpu.PrefetchScalarGridSpec(
            num_scalar_prefetch=0,
            grid=grid,
            in_specs=[
                pl.BlockSpec((1, TN), lambda i, k: (0, k)),    # index chunk
                pl.BlockSpec((TN, Dp), lambda i, k: (k, 0)),   # feature chunk
                # TODO(synk): add pipeline_mode=pl.Buffered(3) on the X spec if
                # profiling shows exposed DMA after the bf16 MXU speedup.
            ],
            out_specs=pl.BlockSpec((TM, Dp), lambda i, k: (i, 0)),
            scratch_shapes=[
                pltpu.VMEM((TM, Dp), jnp.float32),   # segment-sum (+count) accumulator
            ],
        ),
        compiler_params=pltpu.CompilerParams(
            dimension_semantics=("parallel", "arbitrary"),
            vmem_limit_bytes=vmem_limit,
        ),
        cost_estimate=pl.CostEstimate(
            flops=2 * (grid_m * TM) * N_pad * Dp,
            transcendentals=0,
            # X and idx are re-streamed once per output-row tile (grid_m times).
            bytes_accessed=grid_m * (X.size * 2 + idx2.size * 4) + M * Dp * 4,
        ),
    )(idx2, X)

    s_agg = y[:, :d_s].astype(s.dtype)
    V_agg = y[:, d_s:D].reshape(M, r, d_v).astype(V.dtype)
    return s_agg, V_agg


def aggregation_reference(s, V, index, reduce="mean"):
    """Pure-JAX reference mirroring scatter(..., dim=0, dim_size=len(s), reduce=...)."""
    M = s.shape[0]
    onehot = (jnp.arange(M)[:, None] == index[None, :]).astype(s.dtype)   # [M, N]
    s_sum = onehot @ s
    V_sum = jnp.einsum("mn,nrd->mrd", onehot, V)
    if reduce == "mean":
        cnt = jnp.maximum(onehot.sum(axis=1), 1.0)
        s_sum = s_sum / cnt[:, None]
        V_sum = V_sum / cnt[:, None, None]
    return s_sum, V_sum


if __name__ == "__main__":
    # Small, module-consistent shapes; tiles chosen so the grid is (4, 2) and
    # both the parallel output axis and the accumulated reduction axis run.
    N, d_s, r, d_v = 256, 16, 3, 16

    key = jax.random.PRNGKey(0)
    k_s, k_v, k_i = jax.random.split(key, 3)
    s = jax.random.normal(k_s, (N, d_s), dtype=jnp.float32)
    V = jax.random.normal(k_v, (N, r, d_v), dtype=jnp.float32)
    # Target rows in [0, 200): some output rows receive nothing (empty-segment path).
    index = jax.random.randint(k_i, (N,), 0, 200, dtype=jnp.int32)

    fwd = jax.jit(aggregation_forward, static_argnames=("reduce", "tile_m", "tile_n"))
    s_agg, V_agg = fwd(s, V, index, reduce="mean", tile_m=64, tile_n=128)
    jax.block_until_ready((s_agg, V_agg))

    s_ref, V_ref = aggregation_reference(s, V, index, reduce="mean")
    assert s_agg.shape == (N, d_s) and V_agg.shape == (N, r, d_v)
    # bf16 feature inputs + approx reciprocal -> loosen tolerances vs f32 reference.
    assert jnp.allclose(s_agg, s_ref, atol=3e-2, rtol=3e-2)
    assert jnp.allclose(V_agg, V_ref, atol=3e-2, rtol=3e-2)

    print("KERNEL_OK")
</pallas_src>

<mosaic_0001>
module attributes {stable_mosaic.version = 11 : i64} {
  func.func @_agg_kernel(%arg0: i32, %arg1: i32, %arg2: memref<1x128xi32, #tpu.memory_space<vmem>>, %arg3: memref<128x128xbf16, #tpu.memory_space<vmem>>, %arg4: memref<64x128xf32, #tpu.memory_space<vmem>>, %arg5: memref<64x128xf32, #tpu.memory_space<vmem>>) attributes {dimension_semantics = [#tpu.dimension_semantics<parallel>, #tpu.dimension_semantics<arbitrary>], iteration_bounds = array<i64: 4, 2>, scalar_prefetch = 0 : i64, scratch_operands = 1 : i64, tpu.core_type = #tpu.core_type<tc>, window_params = [{transform_indices = @transform_0, window_bounds = array<i64: 1, 128>}, {transform_indices = @transform_1, window_bounds = array<i64: 128, 128>}, {transform_indices = @transform_2, window_bounds = array<i64: 64, 128>}]} {
    %c0_i32 = arith.constant 0 : i32
    %0 = arith.cmpi eq, %arg1, %c0_i32 : i32
    %1 = arith.extui %0 : i1 to i32
    %c0_i32_0 = arith.constant 0 : i32
    %2 = arith.cmpi ne, %1, %c0_i32_0 : i32
    scf.if %2 {
      %cst_9 = arith.constant 0.000000e+00 : f32
      %22 = vector.broadcast %cst_9 : f32 to vector<64x128xf32>
      %c0_10 = arith.constant 0 : index
      %c0_11 = arith.constant 0 : index
      %23 = vector.load %arg5[%c0_10, %c0_11] : memref<64x128xf32, #tpu.memory_space<vmem>>, vector<64x128xf32>
      tpu.vector_store %arg5[%c0_10, %c0_11], %22 {strides = array<i32>} : memref<64x128xf32, #tpu.memory_space<vmem>>, vector<64x128xf32>,
    } else {
    }
    %c64_i32 = arith.constant 64 : i32
    %3 = arith.muli %arg0, %c64_i32 : i32
    %4 = tpu.iota {dimensions = array<i32: 0>} : vector<64x1xi32>
    %5 = vector.broadcast %3 : i32 to vector<64x1xi32>
    %6 = arith.addi %5, %4 : vector<64x1xi32>
    %c0 = arith.constant 0 : index
    %c0_1 = arith.constant 0 : index
    %7 = vector.load %arg2[%c0, %c0_1] : memref<1x128xi32, #tpu.memory_space<vmem>>, vector<1x128xi32>
    %8 = vector.broadcast %7 : vector<1x128xi32> to vector<64x128xi32>
    %9 = vector.broadcast %6 : vector<64x1xi32> to vector<64x128xi32>
    %10 = arith.cmpi eq, %8, %9 : vector<64x128xi32>
    %11 = arith.extui %10 : vector<64x128xi1> to vector<64x128xi32>
    %12 = arith.sitofp %11 : vector<64x128xi32> to vector<64x128xf32>
    %13 = arith.truncf %12 : vector<64x128xf32> to vector<64x128xbf16>
    %c0_2 = arith.constant 0 : index
    %c0_3 = arith.constant 0 : index
    %14 = vector.load %arg5[%c0_2, %c0_3] : memref<64x128xf32, #tpu.memory_space<vmem>>, vector<64x128xf32>
    %c0_4 = arith.constant 0 : index
    %c0_5 = arith.constant 0 : index
    %15 = vector.load %arg3[%c0_4, %c0_5] : memref<128x128xbf16, #tpu.memory_space<vmem>>, vector<128x128xbf16>
    %cst = arith.constant dense<0.000000e+00> : vector<64x128xf32>
    %16 = tpu.matmul %13, %15, %cst {dimension_numbers = #tpu.dot_dimension_numbers<[1], [0], [0], [1], [0, 0, 1, 1], [], []>} : vector<64x128xbf16>, vector<128x128xbf16>, vector<64x128xf32> -> vector<64x128xf32>
    %17 = arith.addf %14, %16 : vector<64x128xf32>
    %c0_6 = arith.constant 0 : index
    %c0_7 = arith.constant 0 : index
    %18 = vector.load %arg5[%c0_6, %c0_7] : memref<64x128xf32, #tpu.memory_space<vmem>>, vector<64x128xf32>
    tpu.vector_store %arg5[%c0_6, %c0_7], %17 {strides = array<i32>} : memref<64x128xf32, #tpu.memory_space<vmem>>, vector<64x128xf32>,
    %c1_i32 = arith.constant 1 : i32
    %19 = arith.cmpi eq, %arg1, %c1_i32 : i32
    %20 = arith.extui %19 : i1 to i32
    %c0_i32_8 = arith.constant 0 : i32
    %21 = arith.cmpi ne, %20, %c0_i32_8 : i32
    scf.if %21 {
      %c0_9 = arith.constant 0 : index
      %c0_10 = arith.constant 0 : index
      %22 = vector.load %arg5[%c0_9, %c0_10] : memref<64x128xf32, #tpu.memory_space<vmem>>, vector<64x128xf32>
      %23 = vector.extract_strided_slice %22 {offsets = [0, 64], sizes = [64, 1], strides = [1, 1]} : vector<64x128xf32> to vector<64x1xf32>
      %cst_11 = arith.constant 1.000000e+00 : f32
      %24 = vector.broadcast %cst_11 : f32 to vector<64x1xf32>
      %25 = arith.maximumf %23, %24 : vector<64x1xf32>
      %26 = tpu.reciprocal %25 {approx = true} : vector<64x1xf32> -> vector<64x1xf32>
      %27 = vector.broadcast %26 : vector<64x1xf32> to vector<64x128xf32>
      %28 = arith.mulf %22, %27 : vector<64x128xf32>
      %c0_12 = arith.constant 0 : index
      %c0_13 = arith.constant 0 : index
      %29 = vector.load %arg4[%c0_12, %c0_13] : memref<64x128xf32, #tpu.memory_space<vmem>>, vector<64x128xf32>
      tpu.vector_store %arg4[%c0_12, %c0_13], %28 {strides = array<i32>} : memref<64x128xf32, #tpu.memory_space<vmem>>, vector<64x128xf32>,
    } else {
    }
    return
  }
  func.func @transform_0(%arg0: i32, %arg1: i32) -> (i32, i32) {
    %c0_i32 = arith.constant 0 : i32
    %c0_i32_0 = arith.constant 0 : i32
    return %c0_i32, %arg1 : i32, i32
  }
  func.func @transform_1(%arg0: i32, %arg1: i32) -> (i32, i32) {
    %c0_i32 = arith.constant 0 : i32
    %c0_i32_0 = arith.constant 0 : i32
    return %arg1, %c0_i32 : i32, i32
  }
  func.func @transform_2(%arg0: i32, %arg1: i32) -> (i32, i32) {
    %c0_i32 = arith.constant 0 : i32
    %c0_i32_0 = arith.constant 0 : i32
    return %arg0, %c0_i32 : i32, i32
  }
}

</mosaic_0001>

<bundles_post_ra>
// kernel: aggregation_forward.1
= control target key start
LH: loop header
LB: loop body
LE: loop exit
PB: predicated region body
PF: predicated region fallthrough
CT: control target
= control target key end

     0   :  { %s770_s9 = smov 0   ;;  %s772_s10 = smov 0   ;;  %s863_s0 = inlined_call_operand.vmem [shape: s32[1,256], index: 0, kind: input, shape index: {}]   ;;  %s864_s1 = inlined_call_operand.vmem [shape: bf16[256,128], index: 1, kind: input, shape index: {}]   ;;  %s865_s2 = inlined_call_operand.vmem [shape: f32[256,128], index: 2, kind: output, shape index: {}]  }
   0x1   :  { %s774_s11 = smov 0   ;;  %s776_s12 = smov 0  }
   0x2   :  { %s778_s13 = smov 0  }
   0x3 LB: > { %s21_s14 = sadd.s32 1, %s742_s11  ;;  %s24_s15 = sadd.s32 1, %s746_s12  ;;  %s750_s13 = sphi %s778_s13, %s12_s13   ;;  %s746_s12 = sphi %s776_s12, %s869_s12   ;;  %s742_s11 = sphi %s774_s11, %s868_s11   ;;  %s738_s10 = sphi %s772_s10, %s867_s10   ;;  %s734_s9 = sphi %s770_s9, %s866_s9  }
   0x4   : > { %p22_p0 = scmp.ge.s32.totalorder %s21_s14, 2  ;;  %p556_p1 = scmp.ge.s32.totalorder %s750_s13, 1 }
   0x5   : > { %p133_p2 = scmp.lt.s32.totalorder %s750_s13, 9 }
   0x6   : > { %s871_s14 = smov (%p22_p0, %s21_s14), 0  ;;  %s873_s15 = smov (!%p22_p0, %s24_s15), %s746_s12 }
   0x7   : > { %p134_p3 = pnand %p556_p1, %p133_p2  ;;  %p26_p4 = scmp.ge.s32.totalorder %s873_s15, 4 }
   0x8   : > { %p158_p5 = scmp.lt.s32.totalorder (!%p134_p3), %s734_s9, 1  ;;  %s557_s16 = sshll.u32 (!%p134_p3), %s734_s9, 4 }
   0x9   : > { %s875_s15 = smov (%p26_p4, %s873_s15), 0  ;;  %137 = sbr.rel (%p134_p3) target bundleno = 421 (0x1a5), region = 28 }
   0xa   : > { %p162_p6 = scmp.lt.s32.totalorder (!%p134_p3), %s557_s16, 31  ;;  %s559_s17 = sshll.u32 (!%p134_p3), %s738_s10, 3 }
   0xb   : > { %p168_p7 = scmp.lt.s32.totalorder (!%p134_p3), %s559_s17, 31  ;;  %p561_p8 = scmp.ne.s32.totalorder (!%p134_p3), %s734_s9, 0 }
   0xe   : > { %s808_s18 = scalar_select %p158_p5, %s734_s9, 1 }
   0xf   : > { %s877_s16 = smov (!%p162_p6, %s557_s16), 31  ;;  %s879_s17 = smov (!%p168_p7, %s559_s17), 31 }
  0x10   : > { %s160_s21 = scalar_lea.vmem %s863_s0, %s808_s18  ;;  %s558_s22 = sshll.u32 %s877_s16, 2 }
  0x11   : > { %s817_s25 = scalar_lea.vmem %s864_s1, %s558_s22  ;;  %s560_s26 = sshll.u32 %s879_s17, 3 }
  0x12   : > { %s822_s29 = scalar_lea.vmem %s865_s2, %s560_s26  ;;  %177 = sbr.rel (%p561_p8) target bundleno = 28 (0x1c), region = 32 }
  0x17   : > { %v752_v0 = vmov 0.0  }
  0x18   : > { %178 = vst [vmem:[#allocation2 + $0x30] sm:$0xff] %v752_v0  ;;  %179 = vst [vmem:[#allocation2] sm:$0xff] %v752_v0 }
  0x19   : > { %180 = vst [vmem:[#allocation2 + $0x18] sm:$0xff] %v752_v0  ;;  %181 = vst [vmem:[#allocation2 + $0x10] sm:$0xff] %v752_v0 }
  0x1a   : > { %182 = vst [vmem:[#allocation2 + $0x8] sm:$0xff] %v752_v0  ;;  %183 = vst [vmem:[#allocation2 + $0x20] sm:$0xff] %v752_v0 }
  0x1b   : > { %184 = vst [vmem:[#allocation2 + $0x28] sm:$0xff] %v752_v0  ;;  %185 = vst [vmem:[#allocation2 + $0x38] sm:$0xff] %v752_v0 }
  0x1c PF: > { %v686_v1 = vld [vmem:[%s817_s25 + $0x38] sm:$0xff]   ;;  %s562_s30 = sshll.u32 %s738_s10, 6  ;;  %v187_v2 = vlaneseq  ;;  %v687_v3 = vld [vmem:[%s817_s25 + $0x30] sm:$0xff]   ;;  %v688_v6 = vld [vmem:[%s817_s25 + $0x28] sm:$0xff]   ;;  %v753_v17 = vmov 1.0|1.0  }
  0x1d   : > { %603 = vmatprep.subr.bf16.mxu0 %v686_v1  ;;  %627 = vmatprep.subr.bf16.mxu1 %v686_v1  ;;  %v196_v5 = vstv %s562_s30  ;;  %v689_v13 = vld [vmem:[%s817_s25 + $0x20] sm:$0xff]   ;;  %v690_v16 = vld [vmem:[%s817_s25 + $0x18] sm:$0xff]   ;;  %v691_v18 = vld [vmem:[%s817_s25 + $0x10] sm:$0xff]   ;;  %p588_p9 = scmp.ne.s32.totalorder %s734_s9, 1 }
  0x1e   : > { %v188_v4 = vshrl.u32 %v187_v2, 7  ;;  %604 = vmatpush3.bf16.msra.mxu0 %v686_v1  ;;  %635 = vmatpush3.bf16.msra.mxu1 %v686_v1  ;;  %v563_v14 = vld [vmem:[%s160_s21] ss:$0 sm:$0xff]  ;;  %v692_v21 = vld [vmem:[%s817_s25 + $0x8] sm:$0xff]  }
  0x1f   : > { %605 = vmatprep.subr.bf16.mxu0 %v687_v3  ;;  %628 = vmatprep.subr.bf16.mxu1 %v687_v3  ;;  %v693_v26 = vld [vmem:[%s817_s25] sm:$0xff]   ;;  %v238_v33 = vld [vmem:[#allocation2 + $0x30] sm:$0xff] }
  0x20   : > { %v189_v7 = vadd.s32 8, %v188_v4  ;;  %v197_v8 = vadd.s32 %v196_v5, %v188_v4  ;;  %v192_v9 = vadd.s32 32, %v188_v4  ;;  %v193_v11 = vadd.s32 40, %v188_v4  ;;  %v240_v29 = vld [vmem:[#allocation2 + $0x18] sm:$0xff]  ;;  %v241_v39 = vld [vmem:[#allocation2 + $0x10] sm:$0xff]  ;;  %v239_v45 = vld [vmem:[#allocation2] sm:$0xff] }
  0x21   : > { %v190_v19 = vadd.s32 16, %v188_v4  ;;  %v191_v20 = vadd.s32 24, %v188_v4  ;;  %v194_v22 = vadd.s32 48, %v188_v4  ;;  %v195_v23 = vadd.s32 56, %v188_v4  ;;  %v242_v34 = vld [vmem:[#allocation2 + $0x8] sm:$0xff]  ;;  %v243_v46 = vld [vmem:[#allocation2 + $0x20] sm:$0xff] }
  0x22   : > { %v198_v10 = vadd.s32 %v196_v5, %v189_v7  ;;  %606 = vmatpush3.bf16.msra.mxu0 %v687_v3  ;;  %636 = vmatpush3.bf16.msra.mxu1 %v687_v3  ;;  %v201_v12 = vadd.s32 %v196_v5, %v192_v9  ;;  %v202_v15 = vadd.s32 %v196_v5, %v193_v11  ;;  %v244_v30 = vld [vmem:[#allocation2 + $0x28] sm:$0xff]  ;;  %v245_v40 = vld [vmem:[#allocation2 + $0x38] sm:$0xff] }
  0x23   : > { %607 = vmatprep.subr.bf16.mxu0 %v688_v6  ;;  %629 = vmatprep.subr.bf16.mxu1 %v688_v6  ;;  %vm210_vm0 = vcmp.eq.s32.totalorder %v563_v14, %v197_v8  ;;  %v199_v24 = vadd.s32 %v196_v5, %v190_v19  ;;  %v200_v25 = vadd.s32 %v196_v5, %v191_v20 }
  0x24   : > { %vm211_vm1 = vcmp.eq.s32.totalorder %v563_v14, %v198_v10  ;;  %vm214_vm2 = vcmp.eq.s32.totalorder %v563_v14, %v201_v12  ;;  %vm215_vm4 = vcmp.eq.s32.totalorder %v563_v14, %v202_v15  ;;  %v203_v27 = vadd.s32 %v196_v5, %v194_v22 }
  0x25   : > { %vm580_vm3 = vmpackc.low %vm211_vm1, %vm210_vm0  ;;  %v204_v28 = vadd.s32 %v196_v5, %v195_v23  ;;  %vm212_vm6 = vcmp.eq.s32.totalorder %v563_v14, %v199_v24  ;;  %vm213_vm7 = vcmp.eq.s32.totalorder %v563_v14, %v200_v25 }
  0x26   : > { %608 = vmatpush3.bf16.msra.mxu0 %v688_v6  ;;  %637 = vmatpush3.bf16.msra.mxu1 %v688_v6  ;;  %vm584_vm5 = vmpackc.low %vm215_vm4, %vm214_vm2  ;;  %vm216_vm8 = vcmp.eq.s32.totalorder %v563_v14, %v203_v27 }
  0x27   : > { %609 = vmatprep.subr.bf16.mxu0 %v689_v13  ;;  %630 = vmatprep.subr.bf16.mxu1 %v689_v13  ;;  %vm217_vm9 = vcmp.eq.s32.totalorder %v563_v14, %v204_v28  ;;  %vm582_vm10 = vmpackc.low %vm213_vm7, %vm212_vm6 }
  0x28   : > { %619 = vmatprep.mubr.msk.bf16.mxu0 %vm580_vm3, %v753_v17  ;;  %623 = vmatprep.mubr.msk.bf16.mxu1 %vm584_vm5, %v753_v17  ;;  %vm586_vm11 = vmpackc.low %vm217_vm9, %vm216_vm8 }
  0x2a   : > { %610 = vmatpush3.bf16.msra.mxu0 %v689_v13  ;;  %638 = vmatpush3.bf16.msra.mxu1 %v689_v13 }
  0x2b   : > { %611 = vmatprep.subr.bf16.mxu0 %v690_v16  ;;  %631 = vmatprep.subr.bf16.mxu1 %v690_v16 }
  0x2e   : > { %612 = vmatpush3.bf16.msra.mxu0 %v690_v16  ;;  %639 = vmatpush3.bf16.msra.mxu1 %v690_v16 }
  0x2f   : > { %613 = vmatprep.subr.bf16.mxu0 %v691_v18  ;;  %632 = vmatprep.subr.bf16.mxu1 %v691_v18 }
  0x32   : > { %614 = vmatpush3.bf16.msra.mxu0 %v691_v18  ;;  %640 = vmatpush3.bf16.msra.mxu1 %v691_v18 }
  0x33   : > { %615 = vmatprep.subr.bf16.mxu0 %v692_v21  ;;  %633 = vmatprep.subr.bf16.mxu1 %v692_v21 }
  0x36   : > { %616 = vmatpush3.bf16.msra.mxu0 %v692_v21  ;;  %641 = vmatpush3.bf16.msra.mxu1 %v692_v21 }
  0x37   : > { %617 = vmatprep.subr.bf16.mxu0 %v693_v26  ;;  %634 = vmatprep.subr.bf16.mxu1 %v693_v26 }
  0x3a   : > { %618 = vmatpush3.bf16.msra.mxu0 %v693_v26  ;;  %642 = vmatpush3.bf16.msra.mxu1 %v693_v26 }
  0x3d   : > { %620 = vmatmul.mubr.msk.bf16.vlgmr.msra.gmra.mxu0 %vm582_vm10, %v753_v17  ;;  %624 = vmatmul.mubr.msk.bf16.vlgmr.msra.gmra.mxu1 %vm586_vm11, %v753_v17 }
  0xfd   : > { %v621_v31 = vpop.f32.mrf.mxu0  ;;  %v625_v32 = vpop.f32.mrf.mxu1 }
  0xfe   : > { %v377_v35 = vadd.f32 %v621_v31, %v240_v29  ;;  %v381_v36 = vadd.f32 %v625_v32, %v244_v30 }
  0xff   : > { %v344_v37 = vpop.f32.mrf.mxu0  ;;  %v360_v38 = vpop.f32.mrf.mxu1 }
 0x100   : > { %385 = vst [vmem:[#allocation2 + $0x18] sm:$0xff] %v377_v35  ;;  %389 = vst [vmem:[#allocation2 + $0x28] sm:$0xff] %v381_v36  ;;  %v375_v41 = vadd.f32 %v344_v37, %v238_v33  ;;  %v379_v42 = vadd.f32 %v360_v38, %v242_v34 }
 0x101   : > { %v622_v43 = vpop.f32.mrf.mxu0  ;;  %v626_v44 = vpop.f32.mrf.mxu1 }
 0x102   : > { %383 = vst [vmem:[#allocation2 + $0x30] sm:$0xff] %v375_v41  ;;  %387 = vst [vmem:[#allocation2 + $0x8] sm:$0xff] %v379_v42  ;;  %v378_v47 = vadd.f32 %v622_v43, %v241_v39  ;;  %v382_v48 = vadd.f32 %v626_v44, %v245_v40  ;;  %394 = sbr.rel (%p588_p9) target bundleno = 421 (0x1a5), region = 36 }
 0x103   : > { %v347_v49 = vpop.f32.mrf.mxu0  ;;  %v363_v50 = vpop.f32.mrf.mxu1 }
 0x104   : > { %386 = vst [vmem:[#allocation2 + $0x10] sm:$0xff] %v378_v47  ;;  %390 = vst [vmem:[#allocation2 + $0x38] sm:$0xff] %v382_v48  ;;  %v376_v51 = vadd.f32 %v347_v49, %v239_v45  ;;  %v380_v52 = vadd.f32 %v363_v50, %v243_v46 }
 0x106   : > { %384 = vst [vmem:[#allocation2] sm:$0xff] %v376_v51  ;;  %388 = vst [vmem:[#allocation2 + $0x20] sm:$0xff] %v380_v52 }
 0x107   : > { %v397_v53 = vld [vmem:[#allocation2 + $0x18] sm:$0xff]  ;;  %v754_v56 = vmov 64   ;;  %v401_v3 = vld [vmem:[#allocation2 + $0x28] sm:$0xff] }
 0x108   : > { %695 = vset.pattern.permute.xlu1 %v754_v56  ;;  %694 = vset.pattern.permute.xlu0 %v754_v56  ;;  %v405_v57 = vmax.f32 %v397_v53, 1.0  ;;  %v409_v5 = vmax.f32 %v401_v3, 1.0 }
 0x109   : > { %v395_v54 = vld [vmem:[#allocation2 + $0x30] sm:$0xff]  ;;  %v399_v63 = vld [vmem:[#allocation2 + $0x8] sm:$0xff] }
 0x10a   : > { %v403_v58 = vmax.f32 %v395_v54, 1.0  ;;  %696 = vrcp.f32 %v405_v57  ;;  %v407_v1 = vmax.f32 %v399_v63, 1.0 }
 0x10b   : > { %v398_v55 = vld [vmem:[#allocation2 + $0x10] sm:$0xff]  ;;  %v402_v2 = vld [vmem:[#allocation2 + $0x38] sm:$0xff] }
 0x10c   : > { %v406_v59 = vmax.f32 %v398_v55, 1.0  ;;  %698 = vrcp.f32 %v403_v58  ;;  %v410_v4 = vmax.f32 %v402_v2, 1.0 }
 0x10d   : > { %v396_v60 = vld [vmem:[#allocation2] sm:$0xff] }
 0x10e   : > { %v404_v61 = vmax.f32 %v396_v60, 1.0  ;;  %v400_v62 = vld [vmem:[#allocation2 + $0x20] sm:$0xff]  ;;  %700 = vrcp.f32 %v406_v59 }
 0x10f   : > { %v408_v0 = vmax.f32 %v400_v62, 1.0 }
 0x110   : > { %702 = vrcp.f32 %v404_v61 }
 0x111   : > { %704 = vrcp.f32 %v408_v0 }
 0x112   : > { %706 = vrcp.f32 %v407_v1 }
 0x113   : > { %708 = vrcp.f32 %v410_v4 }
 0x114   : > { %710 = vrcp.f32 %v409_v5 }
 0x117   : > { %v697_v6 = vpop.eup %696 }
 0x118   : > { %431 = vperm.xlu1 %695, %v697_v6  }
 0x119   : > { %v699_v7 = vpop.eup %698 }
 0x11a   : > { %421 = vperm.xlu0 %694, %v699_v7  }
 0x11b   : > { %v701_v8 = vpop.eup %700 }
 0x11c   : > { %436 = vperm.xlu1 %695, %v701_v8  }
 0x11d   : > { %v703_v9 = vpop.eup %702 }
 0x11e   : > { %v705_v10 = vpop.eup %704  ;;  %426 = vperm.xlu0 %694, %v703_v9  }
 0x11f   : > { %v707_v11 = vpop.eup %706 }
 0x120   : > { %446 = vperm.xlu1 %695, %v705_v10   ;;  %v709_v12 = vpop.eup %708 }
 0x121   : > { %v711_v13 = vpop.eup %710 }
 0x122   : > { %441 = vperm.xlu0 %694, %v707_v11  }
 0x124   : > { %456 = vperm.xlu1 %695, %v709_v12  }
 0x126   : > { %451 = vperm.xlu0 %694, %v711_v13  }
 0x193   : > { %v432_v14 = vpop.permute.xlu1 %431 }
 0x194   : > { %v461_v15 = vmul.f32 %v432_v14, %v397_v53 }
 0x195   : > { %v422_v16 = vpop.permute.xlu0 %421 }
 0x196   : > { %v459_v17 = vmul.f32 %v422_v16, %v395_v54  ;;  %469 = vst [vmem:[%s822_s29 + $0x10] sm:$0xff] %v461_v15 }
 0x197   : > { %v437_v18 = vpop.permute.xlu1 %436 }
 0x198   : > { %467 = vst [vmem:[%s822_s29] sm:$0xff] %v459_v17  ;;  %v462_v19 = vmul.f32 %v437_v18, %v398_v55 }
 0x199   : > { %v427_v20 = vpop.permute.xlu0 %426 }
 0x19a   : > { %v460_v21 = vmul.f32 %v427_v20, %v396_v60  ;;  %470 = vst [vmem:[%s822_s29 + $0x18] sm:$0xff] %v462_v19 }
 0x19b   : > { %v447_v22 = vpop.permute.xlu1 %446 }
 0x19c   : > { %468 = vst [vmem:[%s822_s29 + $0x8] sm:$0xff] %v460_v21  ;;  %v464_v23 = vmul.f32 %v447_v22, %v400_v62 }
 0x19d   : > { %v442_v24 = vpop.permute.xlu0 %441 }
 0x19e   : > { %v463_v25 = vmul.f32 %v442_v24, %v399_v63  ;;  %472 = vst [vmem:[%s822_s29 + $0x28] sm:$0xff] %v464_v23 }
 0x19f   : > { %v457_v26 = vpop.permute.xlu1 %456 }
 0x1a0   : > { %471 = vst [vmem:[%s822_s29 + $0x20] sm:$0xff] %v463_v25  ;;  %v466_v27 = vmul.f32 %v457_v26, %v402_v2 }
 0x1a1   : > { %v452_v28 = vpop.permute.xlu0 %451 }
 0x1a2   : > { %v465_v29 = vmul.f32 %v452_v28, %v401_v3  ;;  %474 = vst [vmem:[%s822_s29 + $0x38] sm:$0xff] %v466_v27 }
 0x1a4   : > { %473 = vst [vmem:[%s822_s29 + $0x30] sm:$0xff] %v465_v29 }
 0x1a5 PF: > { %s12_s13 = sadd.s32 1, %s750_s13   ;;  %s866_s9 = smov %s742_s11 }
 0x1a6   : > { %p9_p10 = scmp.ge.s32.totalorder %s12_s13, 10   ;;  %s867_s10 = smov %s746_s12 }
 0x1a7   : > { %s868_s11 = smov %s871_s14  ;;  %s869_s12 = smov %s875_s15 }
 0x1a8   :  { %11 = sbr.rel (!%p9_p10) target bundleno = 3 (0x3), region = 69 }

</bundles_post_ra>
